<compile_context>
chip_gen: v7x
topology: tpu7x:2x2x1
jax: 0.10.0
libtpu: 0.0.40
codegen_flags: <defaults>
</compile_context>

<pallas_src>
import jax
import jax.numpy as jnp
from jax.experimental import pallas as pl
from jax.experimental.pallas import tpu as pltpu


def mcunit_kernel(x_ref, t1_ref, b1_ref, t2_ref, b2_ref, o_ref,
                  xp_ref, catp_ref):
    # x_ref  : (1, H, W*C)      one image as a lane-dense row slab
    # t1_ref : (5, W*C, W*2C)   per-kh width-Toeplitz weights (branches fused)
    # b1_ref : (1, W*2C)
    # t2_ref : (5, W*2C, W*C)   per-kh width-Toeplitz weights (5x5 o 1x1 fused)
    # b2_ref : (1, W*C)
    # o_ref  : (1, H, W*C)
    # xp_ref : VMEM (H+4, W*C)   row-padded input scratch
    # catp_ref: VMEM (H+4, W*2C) row-padded intermediate scratch
    _, H, WC = o_ref.shape
    WC2 = catp_ref.shape[1]

    # Row-pad the input (width padding is already folded into the Toeplitz
    # weights).  Zero only the 2-row top/bottom borders; interior is written.
    zx = jnp.zeros((2, WC), jnp.float32)
    xp_ref[0:2, :] = zx
    xp_ref[H + 2:H + 4, :] = zx
    xp_ref[2:H + 2, :] = x_ref[0]

    # Conv 1: fused (3x3 || 5x5) -> 2C channels, + bias, single ReLU.
    acc1 = jnp.zeros((H, WC2), jnp.float32)
    for kh in range(5):
        acc1 = acc1 + jnp.dot(xp_ref[kh:kh + H, :], t1_ref[kh],
                              preferred_element_type=jnp.float32)
    cat = jnp.maximum(acc1 + b1_ref[0], 0.0)

    # Row-pad the intermediate.
    zc = jnp.zeros((2, WC2), jnp.float32)
    catp_ref[0:2, :] = zc
    catp_ref[H + 2:H + 4, :] = zc
    catp_ref[2:H + 2, :] = cat

    # Conv 2: fused 5x5 (2C->2C) o 1x1 (2C->C), + fused bias, no activation.
    acc2 = jnp.zeros((H, WC), jnp.float32)
    for kh in range(5):
        acc2 = acc2 + jnp.dot(catp_ref[kh:kh + H, :], t2_ref[kh],
                              preferred_element_type=jnp.float32)
    o_ref[...] = (acc2 + b2_ref[0]).reshape(1, H, WC).astype(o_ref.dtype)


def _prepare_weights(params, W, C):
    """Fuse branches + fold the 1x1 conv, and build width-Toeplitz matrices."""
    w3, b3, w5, b5, wc5, bc5, wc1, bc1 = params
    C2 = 2 * C

    # (a) fuse the 3x3 and 5x5 branches into a single 5x5 conv -> 2C channels.
    w3p = jnp.pad(w3, ((1, 1), (1, 1), (0, 0), (0, 0)))           # (5,5,C,C)
    w_br = jnp.concatenate([w3p, w5], axis=-1)                    # (5,5,C,2C)
    b_br = jnp.concatenate([b3, b5], axis=0)                      # (2C,)

    # (b) fold the trailing 1x1 conv into the mid 5x5 conv (exact, no act).
    wc1_2d = wc1.reshape(C2, C)
    w_mid = jnp.einsum('hwio,oc->hwic', wc5, wc1_2d)              # (5,5,2C,C)
    b_mid = bc5 @ wc1_2d + bc1                                    # (C,)

    # (c) block-Toeplitz along width, folding the width zero-padding:
    #     T[kh][wq*cin+ci, wo*cout+co] = w[kh, wq-wo+2, ci, co] if valid else 0
    wq = jnp.arange(W)[:, None]        # source column
    wo = jnp.arange(W)[None, :]        # output column
    kw = wq - wo + 2
    valid = ((kw >= 0) & (kw < 5)).astype(jnp.float32)
    kw_c = jnp.clip(kw, 0, 4)

    def toeplitz(w):                   # (5,5,cin,cout) -> (5, W*cin, W*cout)
        cin, cout = w.shape[2], w.shape[3]
        t = w[:, kw_c] * valid[None, :, :, None, None]            # (5,W,W,ci,co)
        t = jnp.transpose(t, (0, 1, 3, 2, 4))                     # (5,W,ci,W,co)
        return t.reshape(5, W * cin, W * cout)

    t1 = toeplitz(w_br)                                           # (5,W*C,W*2C)
    t2 = toeplitz(w_mid)                                          # (5,W*2C,W*C)
    b1 = jnp.tile(b_br, W).reshape(1, W * C2)
    b2 = jnp.tile(b_mid, W).reshape(1, W * C)
    return t1, b1, t2, b2


def mcunit_forward(x_nhwc, params):
    """x_nhwc: (N, H, W, C) float32.  Returns (N, H, W, C)."""
    N, H, W, C = x_nhwc.shape
    C2 = 2 * C
    # TODO(synk): in a real deployment these fused/Toeplitz weights would be
    # precomputed once at load time, not per forward call.
    t1, b1, t2, b2 = _prepare_weights(params, W, C)

    x_slab = x_nhwc.reshape(N, H, W * C)   # free reshape, lane-dense rows

    full = lambda shape: pl.BlockSpec(shape, lambda n: (0,) * len(shape))

    out = pl.pallas_call(
        mcunit_kernel,
        out_shape=jax.ShapeDtypeStruct((N, H, W * C), jnp.float32),
        grid_spec=pltpu.PrefetchScalarGridSpec(
            num_scalar_prefetch=0,
            grid=(N,),
            in_specs=[
                pl.BlockSpec((1, H, W * C), lambda n: (n, 0, 0)),
                full((5, W * C, W * C2)), full((1, W * C2)),
                full((5, W * C2, W * C)), full((1, W * C)),
            ],
            out_specs=pl.BlockSpec((1, H, W * C), lambda n: (n, 0, 0)),
            scratch_shapes=[pltpu.VMEM((H + 4, W * C), jnp.float32),
                            pltpu.VMEM((H + 4, W * C2), jnp.float32)],
        ),
        compiler_params=pltpu.CompilerParams(
            dimension_semantics=("parallel",)),
    )(x_slab, t1, b1, t2, b2)
    return out.reshape(N, H, W, C)


def mcunit_reference(x_nhwc, params):
    """Pure-JAX reference (unfused lax.conv) for validation."""
    w3, b3, w5, b5, wc5, bc5, wc1, bc1 = params

    def conv(x, w, b, pad):
        y = jax.lax.conv_general_dilated(
            x, w, window_strides=(1, 1), padding=[(pad, pad), (pad, pad)],
            dimension_numbers=("NHWC", "HWIO", "NHWC"))
        return y + b

    o3 = jax.nn.relu(conv(x_nhwc, w3, b3, 1))
    o5 = jax.nn.relu(conv(x_nhwc, w5, b5, 2))
    cat = jax.nn.relu(jnp.concatenate([o3, o5], axis=-1))
    mid = conv(cat, wc5, bc5, 2)
    out = conv(mid, wc1, bc1, 0)
    return out


def init_params(key, C):
    ks = jax.random.split(key, 8)
    scale = 0.1
    w3 = scale * jax.random.normal(ks[0], (3, 3, C, C), jnp.float32)
    b3 = scale * jax.random.normal(ks[1], (C,), jnp.float32)
    w5 = scale * jax.random.normal(ks[2], (5, 5, C, C), jnp.float32)
    b5 = scale * jax.random.normal(ks[3], (C,), jnp.float32)
    wc5 = scale * jax.random.normal(ks[4], (5, 5, 2 * C, 2 * C), jnp.float32)
    bc5 = scale * jax.random.normal(ks[5], (2 * C,), jnp.float32)
    wc1 = scale * jax.random.normal(ks[6], (1, 1, 2 * C, C), jnp.float32)
    bc1 = scale * jax.random.normal(ks[7], (C,), jnp.float32)
    return (w3, b3, w5, b5, wc5, bc5, wc1, bc1)


if __name__ == "__main__":
    key = jax.random.PRNGKey(0)
    k_x, k_p = jax.random.split(key)

    N, C, H, W = 2, 4, 16, 16          # num_features = 4
    x_nchw = jax.random.normal(k_x, (N, C, H, W), jnp.float32)   # PyTorch layout
    x_nhwc = jnp.transpose(x_nchw, (0, 2, 3, 1))
    params = init_params(k_p, C)

    out = mcunit_forward(x_nhwc, params)
    out = jax.block_until_ready(out)

    ref = mcunit_reference(x_nhwc, params)
    assert out.shape == (N, H, W, C)
    err = jnp.max(jnp.abs(out - ref))
    assert jnp.allclose(out, ref, atol=1e-4, rtol=1e-4), f"max err {err}"

    print("KERNEL_OK")
</pallas_src>

<mosaic_0001>
module attributes {stable_mosaic.version = 11 : i64} {
  func.func @mcunit_kernel(%arg0: i32, %arg1: memref<1x16x64xf32, #tpu.memory_space<vmem>>, %arg2: memref<5x64x128xf32, #tpu.memory_space<vmem>>, %arg3: memref<1x128xf32, #tpu.memory_space<vmem>>, %arg4: memref<5x128x64xf32, #tpu.memory_space<vmem>>, %arg5: memref<1x64xf32, #tpu.memory_space<vmem>>, %arg6: memref<1x16x64xf32, #tpu.memory_space<vmem>>, %arg7: memref<20x64xf32, #tpu.memory_space<vmem>>, %arg8: memref<20x128xf32, #tpu.memory_space<vmem>>) attributes {dimension_semantics = [#tpu.dimension_semantics<parallel>], iteration_bounds = array<i64: 2>, scalar_prefetch = 0 : i64, scratch_operands = 2 : i64, tpu.core_type = #tpu.core_type<tc>, window_params = [{transform_indices = @transform_0, window_bounds = array<i64: 1, 16, 64>}, {pipeline_mode = #tpu.pipeline_mode<synchronous>, transform_indices = @transform_1, window_bounds = array<i64: 5, 64, 128>}, {pipeline_mode = #tpu.pipeline_mode<synchronous>, transform_indices = @transform_2, window_bounds = array<i64: 1, 128>}, {pipeline_mode = #tpu.pipeline_mode<synchronous>, transform_indices = @transform_3, window_bounds = array<i64: 5, 128, 64>}, {pipeline_mode = #tpu.pipeline_mode<synchronous>, transform_indices = @transform_4, window_bounds = array<i64: 1, 64>}, {transform_indices = @transform_5, window_bounds = array<i64: 1, 16, 64>}]} {
    %cst = arith.constant 0.000000e+00 : f32
    %0 = vector.broadcast %cst : f32 to vector<2x64xf32>
    %c0 = arith.constant 0 : index
    %c0_0 = arith.constant 0 : index
    %1 = vector.load %arg7[%c0, %c0_0] : memref<20x64xf32, #tpu.memory_space<vmem>>, vector<2x64xf32>
    tpu.vector_store %arg7[%c0, %c0_0], %0 {strides = array<i32>} : memref<20x64xf32, #tpu.memory_space<vmem>>, vector<2x64xf32>,
    %c18 = arith.constant 18 : index
    %c0_1 = arith.constant 0 : index
    %2 = vector.load %arg7[%c18, %c0_1] : memref<20x64xf32, #tpu.memory_space<vmem>>, vector<2x64xf32>
    tpu.vector_store %arg7[%c18, %c0_1], %0 {strides = array<i32>} : memref<20x64xf32, #tpu.memory_space<vmem>>, vector<2x64xf32>,
    %c0_2 = arith.constant 0 : index
    %c0_3 = arith.constant 0 : index
    %c0_4 = arith.constant 0 : index
    %3 = vector.load %arg1[%c0_2, %c0_3, %c0_4] : memref<1x16x64xf32, #tpu.memory_space<vmem>>, vector<1x16x64xf32>
    %4 = vector.shape_cast %3 : vector<1x16x64xf32> to vector<16x64xf32>
    %c2 = arith.constant 2 : index
    %c0_5 = arith.constant 0 : index
    %5 = vector.load %arg7[%c2, %c0_5] : memref<20x64xf32, #tpu.memory_space<vmem>>, vector<16x64xf32>
    tpu.vector_store %arg7[%c2, %c0_5], %4 {strides = array<i32>} : memref<20x64xf32, #tpu.memory_space<vmem>>, vector<16x64xf32>,
    %cst_6 = arith.constant 0.000000e+00 : f32
    %6 = vector.broadcast %cst_6 : f32 to vector<16x128xf32>
    %c0_7 = arith.constant 0 : index
    %c0_8 = arith.constant 0 : index
    %7 = vector.load %arg7[%c0_7, %c0_8] : memref<20x64xf32, #tpu.memory_space<vmem>>, vector<16x64xf32>
    %c0_9 = arith.constant 0 : index
    %c0_10 = arith.constant 0 : index
    %c0_11 = arith.constant 0 : index
    %8 = vector.load %arg2[%c0_9, %c0_10, %c0_11] : memref<5x64x128xf32, #tpu.memory_space<vmem>>, vector<1x64x128xf32>
    %9 = vector.shape_cast %8 : vector<1x64x128xf32> to vector<64x128xf32>
    %cst_12 = arith.constant dense<0.000000e+00> : vector<16x128xf32>
    %10 = tpu.matmul %7, %9, %cst_12 {dimension_numbers = #tpu.dot_dimension_numbers<[1], [0], [0], [1], [0, 0, 1, 1], [], []>} : vector<16x64xf32>, vector<64x128xf32>, vector<16x128xf32> -> vector<16x128xf32>
    %11 = arith.addf %6, %10 : vector<16x128xf32>
    %c1 = arith.constant 1 : index
    %c0_13 = arith.constant 0 : index
    %12 = vector.load %arg7[%c1, %c0_13] : memref<20x64xf32, #tpu.memory_space<vmem>>, vector<16x64xf32>
    %c1_14 = arith.constant 1 : index
    %c0_15 = arith.constant 0 : index
    %c0_16 = arith.constant 0 : index
    %13 = vector.load %arg2[%c1_14, %c0_15, %c0_16] : memref<5x64x128xf32, #tpu.memory_space<vmem>>, vector<1x64x128xf32>
    %14 = vector.shape_cast %13 : vector<1x64x128xf32> to vector<64x128xf32>
    %cst_17 = arith.constant dense<0.000000e+00> : vector<16x128xf32>
    %15 = tpu.matmul %12, %14, %cst_17 {dimension_numbers = #tpu.dot_dimension_numbers<[1], [0], [0], [1], [0, 0, 1, 1], [], []>} : vector<16x64xf32>, vector<64x128xf32>, vector<16x128xf32> -> vector<16x128xf32>
    %16 = arith.addf %11, %15 : vector<16x128xf32>
    %c2_18 = arith.constant 2 : index
    %c0_19 = arith.constant 0 : index
    %17 = vector.load %arg7[%c2_18, %c0_19] : memref<20x64xf32, #tpu.memory_space<vmem>>, vector<16x64xf32>
    %c2_20 = arith.constant 2 : index
    %c0_21 = arith.constant 0 : index
    %c0_22 = arith.constant 0 : index
    %18 = vector.load %arg2[%c2_20, %c0_21, %c0_22] : memref<5x64x128xf32, #tpu.memory_space<vmem>>, vector<1x64x128xf32>
    %19 = vector.shape_cast %18 : vector<1x64x128xf32> to vector<64x128xf32>
    %cst_23 = arith.constant dense<0.000000e+00> : vector<16x128xf32>
    %20 = tpu.matmul %17, %19, %cst_23 {dimension_numbers = #tpu.dot_dimension_numbers<[1], [0], [0], [1], [0, 0, 1, 1], [], []>} : vector<16x64xf32>, vector<64x128xf32>, vector<16x128xf32> -> vector<16x128xf32>
    %21 = arith.addf %16, %20 : vector<16x128xf32>
    %c3 = arith.constant 3 : index
    %c0_24 = arith.constant 0 : index
    %22 = vector.load %arg7[%c3, %c0_24] : memref<20x64xf32, #tpu.memory_space<vmem>>, vector<16x64xf32>
    %c3_25 = arith.constant 3 : index
    %c0_26 = arith.constant 0 : index
    %c0_27 = arith.constant 0 : index
    %23 = vector.load %arg2[%c3_25, %c0_26, %c0_27] : memref<5x64x128xf32, #tpu.memory_space<vmem>>, vector<1x64x128xf32>
    %24 = vector.shape_cast %23 : vector<1x64x128xf32> to vector<64x128xf32>
    %cst_28 = arith.constant dense<0.000000e+00> : vector<16x128xf32>
    %25 = tpu.matmul %22, %24, %cst_28 {dimension_numbers = #tpu.dot_dimension_numbers<[1], [0], [0], [1], [0, 0, 1, 1], [], []>} : vector<16x64xf32>, vector<64x128xf32>, vector<16x128xf32> -> vector<16x128xf32>
    %26 = arith.addf %21, %25 : vector<16x128xf32>
    %c4 = arith.constant 4 : index
    %c0_29 = arith.constant 0 : index
    %27 = vector.load %arg7[%c4, %c0_29] : memref<20x64xf32, #tpu.memory_space<vmem>>, vector<16x64xf32>
    %c4_30 = arith.constant 4 : index
    %c0_31 = arith.constant 0 : index
    %c0_32 = arith.constant 0 : index
    %28 = vector.load %arg2[%c4_30, %c0_31, %c0_32] : memref<5x64x128xf32, #tpu.memory_space<vmem>>, vector<1x64x128xf32>
    %29 = vector.shape_cast %28 : vector<1x64x128xf32> to vector<64x128xf32>
    %cst_33 = arith.constant dense<0.000000e+00> : vector<16x128xf32>
    %30 = tpu.matmul %27, %29, %cst_33 {dimension_numbers = #tpu.dot_dimension_numbers<[1], [0], [0], [1], [0, 0, 1, 1], [], []>} : vector<16x64xf32>, vector<64x128xf32>, vector<16x128xf32> -> vector<16x128xf32>
    %31 = arith.addf %26, %30 : vector<16x128xf32>
    %c0_34 = arith.constant 0 : index
    %c0_35 = arith.constant 0 : index
    %32 = vector.load %arg3[%c0_34, %c0_35] : memref<1x128xf32, #tpu.memory_space<vmem>>, vector<1x128xf32>
    %33 = vector.shape_cast %32 : vector<1x128xf32> to vector<128xf32>
    %34 = vector.shape_cast %33 : vector<128xf32> to vector<1x128xf32>
    %35 = vector.broadcast %34 : vector<1x128xf32> to vector<16x128xf32>
    %36 = arith.addf %31, %35 : vector<16x128xf32>
    %cst_36 = arith.constant 0.000000e+00 : f32
    %37 = vector.broadcast %cst_36 : f32 to vector<16x128xf32>
    %38 = arith.maximumf %36, %37 : vector<16x128xf32>
    %cst_37 = arith.constant 0.000000e+00 : f32
    %39 = vector.broadcast %cst_37 : f32 to vector<2x128xf32>
    %c0_38 = arith.constant 0 : index
    %c0_39 = arith.constant 0 : index
    %40 = vector.load %arg8[%c0_38, %c0_39] : memref<20x128xf32, #tpu.memory_space<vmem>>, vector<2x128xf32>
    tpu.vector_store %arg8[%c0_38, %c0_39], %39 {strides = array<i32>} : memref<20x128xf32, #tpu.memory_space<vmem>>, vector<2x128xf32>,
    %c18_40 = arith.constant 18 : index
    %c0_41 = arith.constant 0 : index
    %41 = vector.load %arg8[%c18_40, %c0_41] : memref<20x128xf32, #tpu.memory_space<vmem>>, vector<2x128xf32>
    tpu.vector_store %arg8[%c18_40, %c0_41], %39 {strides = array<i32>} : memref<20x128xf32, #tpu.memory_space<vmem>>, vector<2x128xf32>,
    %c2_42 = arith.constant 2 : index
    %c0_43 = arith.constant 0 : index
    %42 = vector.load %arg8[%c2_42, %c0_43] : memref<20x128xf32, #tpu.memory_space<vmem>>, vector<16x128xf32>
    tpu.vector_store %arg8[%c2_42, %c0_43], %38 {strides = array<i32>} : memref<20x128xf32, #tpu.memory_space<vmem>>, vector<16x128xf32>,
    %cst_44 = arith.constant 0.000000e+00 : f32
    %43 = vector.broadcast %cst_44 : f32 to vector<16x64xf32>
    %c0_45 = arith.constant 0 : index
    %c0_46 = arith.constant 0 : index
    %44 = vector.load %arg8[%c0_45, %c0_46] : memref<20x128xf32, #tpu.memory_space<vmem>>, vector<16x128xf32>
    %c0_47 = arith.constant 0 : index
    %c0_48 = arith.constant 0 : index
    %c0_49 = arith.constant 0 : index
    %45 = vector.load %arg4[%c0_47, %c0_48, %c0_49] : memref<5x128x64xf32, #tpu.memory_space<vmem>>, vector<1x128x64xf32>
    %46 = vector.shape_cast %45 : vector<1x128x64xf32> to vector<128x64xf32>
    %cst_50 = arith.constant dense<0.000000e+00> : vector<16x64xf32>
    %47 = tpu.matmul %44, %46, %cst_50 {dimension_numbers = #tpu.dot_dimension_numbers<[1], [0], [0], [1], [0, 0, 1, 1], [], []>} : vector<16x128xf32>, vector<128x64xf32>, vector<16x64xf32> -> vector<16x64xf32>
    %48 = arith.addf %43, %47 : vector<16x64xf32>
    %c1_51 = arith.constant 1 : index
    %c0_52 = arith.constant 0 : index
    %49 = vector.load %arg8[%c1_51, %c0_52] : memref<20x128xf32, #tpu.memory_space<vmem>>, vector<16x128xf32>
    %c1_53 = arith.constant 1 : index
    %c0_54 = arith.constant 0 : index
    %c0_55 = arith.constant 0 : index
    %50 = vector.load %arg4[%c1_53, %c0_54, %c0_55] : memref<5x128x64xf32, #tpu.memory_space<vmem>>, vector<1x128x64xf32>
    %51 = vector.shape_cast %50 : vector<1x128x64xf32> to vector<128x64xf32>
    %cst_56 = arith.constant dense<0.000000e+00> : vector<16x64xf32>
    %52 = tpu.matmul %49, %51, %cst_56 {dimension_numbers = #tpu.dot_dimension_numbers<[1], [0], [0], [1], [0, 0, 1, 1], [], []>} : vector<16x128xf32>, vector<128x64xf32>, vector<16x64xf32> -> vector<16x64xf32>
    %53 = arith.addf %48, %52 : vector<16x64xf32>
    %c2_57 = arith.constant 2 : index
    %c0_58 = arith.constant 0 : index
    %54 = vector.load %arg8[%c2_57, %c0_58] : memref<20x128xf32, #tpu.memory_space<vmem>>, vector<16x128xf32>
    %c2_59 = arith.constant 2 : index
    %c0_60 = arith.constant 0 : index
    %c0_61 = arith.constant 0 : index
    %55 = vector.load %arg4[%c2_59, %c0_60, %c0_61] : memref<5x128x64xf32, #tpu.memory_space<vmem>>, vector<1x128x64xf32>
    %56 = vector.shape_cast %55 : vector<1x128x64xf32> to vector<128x64xf32>
    %cst_62 = arith.constant dense<0.000000e+00> : vector<16x64xf32>
    %57 = tpu.matmul %54, %56, %cst_62 {dimension_numbers = #tpu.dot_dimension_numbers<[1], [0], [0], [1], [0, 0, 1, 1], [], []>} : vector<16x128xf32>, vector<128x64xf32>, vector<16x64xf32> -> vector<16x64xf32>
    %58 = arith.addf %53, %57 : vector<16x64xf32>
    %c3_63 = arith.constant 3 : index
    %c0_64 = arith.constant 0 : index
    %59 = vector.load %arg8[%c3_63, %c0_64] : memref<20x128xf32, #tpu.memory_space<vmem>>, vector<16x128xf32>
    %c3_65 = arith.constant 3 : index
    %c0_66 = arith.constant 0 : index
    %c0_67 = arith.constant 0 : index
    %60 = vector.load %arg4[%c3_65, %c0_66, %c0_67] : memref<5x128x64xf32, #tpu.memory_space<vmem>>, vector<1x128x64xf32>
    %61 = vector.shape_cast %60 : vector<1x128x64xf32> to vector<128x64xf32>
    %cst_68 = arith.constant dense<0.000000e+00> : vector<16x64xf32>
    %62 = tpu.matmul %59, %61, %cst_68 {dimension_numbers = #tpu.dot_dimension_numbers<[1], [0], [0], [1], [0, 0, 1, 1], [], []>} : vector<16x128xf32>, vector<128x64xf32>, vector<16x64xf32> -> vector<16x64xf32>
    %63 = arith.addf %58, %62 : vector<16x64xf32>
    %c4_69 = arith.constant 4 : index
    %c0_70 = arith.constant 0 : index
    %64 = vector.load %arg8[%c4_69, %c0_70] : memref<20x128xf32, #tpu.memory_space<vmem>>, vector<16x128xf32>
    %c4_71 = arith.constant 4 : index
    %c0_72 = arith.constant 0 : index
    %c0_73 = arith.constant 0 : index
    %65 = vector.load %arg4[%c4_71, %c0_72, %c0_73] : memref<5x128x64xf32, #tpu.memory_space<vmem>>, vector<1x128x64xf32>
    %66 = vector.shape_cast %65 : vector<1x128x64xf32> to vector<128x64xf32>
    %cst_74 = arith.constant dense<0.000000e+00> : vector<16x64xf32>
    %67 = tpu.matmul %64, %66, %cst_74 {dimension_numbers = #tpu.dot_dimension_numbers<[1], [0], [0], [1], [0, 0, 1, 1], [], []>} : vector<16x128xf32>, vector<128x64xf32>, vector<16x64xf32> -> vector<16x64xf32>
    %68 = arith.addf %63, %67 : vector<16x64xf32>
    %c0_75 = arith.constant 0 : index
    %c0_76 = arith.constant 0 : index
    %69 = vector.load %arg5[%c0_75, %c0_76] : memref<1x64xf32, #tpu.memory_space<vmem>>, vector<1x64xf32>
    %70 = vector.shape_cast %69 : vector<1x64xf32> to vector<64xf32>
    %71 = vector.shape_cast %70 : vector<64xf32> to vector<1x64xf32>
    %72 = vector.broadcast %71 : vector<1x64xf32> to vector<16x64xf32>
    %73 = arith.addf %68, %72 : vector<16x64xf32>
    %74 = vector.shape_cast %73 : vector<16x64xf32> to vector<1x16x64xf32>
    %c0_77 = arith.constant 0 : index
    %c0_78 = arith.constant 0 : index
    %c0_79 = arith.constant 0 : index
    %75 = vector.load %arg6[%c0_77, %c0_78, %c0_79] : memref<1x16x64xf32, #tpu.memory_space<vmem>>, vector<1x16x64xf32>
    tpu.vector_store %arg6[%c0_77, %c0_78, %c0_79], %74 {strides = array<i32>} : memref<1x16x64xf32, #tpu.memory_space<vmem>>, vector<1x16x64xf32>,
    return
  }
  func.func @transform_0(%arg0: i32) -> (i32, i32, i32) {
    %c0_i32 = arith.constant 0 : i32
    %c0_i32_0 = arith.constant 0 : i32
    %c0_i32_1 = arith.constant 0 : i32
    return %arg0, %c0_i32, %c0_i32_0 : i32, i32, i32
  }
  func.func @transform_1(%arg0: i32) -> (i32, i32, i32) {
    %c0_i32 = arith.constant 0 : i32
    %c0_i32_0 = arith.constant 0 : i32
    %c0_i32_1 = arith.constant 0 : i32
    %c0_i32_2 = arith.constant 0 : i32
    return %c0_i32, %c0_i32_0, %c0_i32_1 : i32, i32, i32
  }
  func.func @transform_2(%arg0: i32) -> (i32, i32) {
    %c0_i32 = arith.constant 0 : i32
    %c0_i32_0 = arith.constant 0 : i32
    %c0_i32_1 = arith.constant 0 : i32
    return %c0_i32, %c0_i32_0 : i32, i32
  }
  func.func @transform_3(%arg0: i32) -> (i32, i32, i32) {
    %c0_i32 = arith.constant 0 : i32
    %c0_i32_0 = arith.constant 0 : i32
    %c0_i32_1 = arith.constant 0 : i32
    %c0_i32_2 = arith.constant 0 : i32
    return %c0_i32, %c0_i32_0, %c0_i32_1 : i32, i32, i32
  }
  func.func @transform_4(%arg0: i32) -> (i32, i32) {
    %c0_i32 = arith.constant 0 : i32
    %c0_i32_0 = arith.constant 0 : i32
    %c0_i32_1 = arith.constant 0 : i32
    return %c0_i32, %c0_i32_0 : i32, i32
  }
  func.func @transform_5(%arg0: i32) -> (i32, i32, i32) {
    %c0_i32 = arith.constant 0 : i32
    %c0_i32_0 = arith.constant 0 : i32
    %c0_i32_1 = arith.constant 0 : i32
    return %arg0, %c0_i32, %c0_i32_0 : i32, i32, i32
  }
}

</mosaic_0001>

<bundles_post_ra>
// kernel: tpu_custom_call.1
= control target key start
LH: loop header
LB: loop body
LE: loop exit
PB: predicated region body
PF: predicated region fallthrough
CT: control target
= control target key end

     0   :  { %10 = vsyncpa [#allocation5], 0  ;;  %s2684_s0 = inlined_call_operand.vmem [shape: f32[2,16,64], index: 0, kind: input, shape index: {}]   ;;  %s2685_s1 = inlined_call_operand.vmem [shape: f32[5,64,128], index: 1, kind: input, shape index: {}]   ;;  %s2686_s2 = inlined_call_operand.vmem [shape: f32[1,128], index: 2, kind: input, shape index: {}]   ;;  %s2687_s3 = inlined_call_operand.vmem [shape: f32[5,128,64], index: 3, kind: input, shape index: {}]   ;;  %s2688_s4 = inlined_call_operand.vmem [shape: f32[1,64], index: 4, kind: input, shape index: {}]   ;;  %s2689_s5 = inlined_call_operand.hbm [shape: f32[2,16,64], index: 5, kind: output, shape index: {}]  }
   0x1   :  { %12 = vsyncpa [#allocation5 + $0x1], 0  ;;  %s2201_s18 = smov 0   ;;  %s2203_s19 = smov 0  }
   0x2   :  { %s2205_s20 = smov 0   ;;  %s2207_s21 = smov 0  }
   0x3 LB: > { %s2222_s22 = sadd.s32 4294967295, %s2165_s21   ;;  %s1273_s23 = sadd.s32 4294967294, %s2165_s21   ;;  %s2165_s21 = sphi %s2207_s21, %s2695_s21   ;;  %s2161_s20 = sphi %s2205_s20, %s2694_s20   ;;  %s2157_s19 = sphi %s2203_s19, %s2693_s19   ;;  %s2153_s18 = sphi %s2201_s18, %s2692_s18  }
   0x4   : > { %s2226_s24 = sadd.s32 1, %s2165_s21   ;;  %s135_s25 = sadd.s32 1, %s2161_s20 }
   0x5   : > { %s132_s26 = ssub.s32 %s2165_s21, %s2226_s24  ;;  %p145_p0 = scmp.ne.s32.totalorder %s2161_s20, %s2157_s19 }
   0x6   : > { %p133_p1 = scmp.eq.s32.totalorder %s132_s26, 0  ;;  %p146_p2 = scmp.eq.s32.totalorder %s2222_s22, 1 }
   0x7   : > { %p151_p3 = scmp.ne.s32.totalorder %s2157_s19, %s2153_s18  ;;  %p152_p4 = scmp.eq.s32.totalorder %s1273_s23, 1 }
   0x8   : > { %s2237_s27 = scalar_select %p133_p1, %s2161_s20, %s135_s25  }
   0x9   : > { %p2239_p5 = por %p146_p2, %p145_p0  ;;  %p2243_p6 = por %p152_p4, %p151_p3 }
   0xa   : > { %p1276_p7 = scmp.ge.s32.totalorder %s2165_s21, 1  ;;  %p190_p8 = scmp.lt.s32.totalorder %s2165_s21, 3 }
   0xc   : > { %p191_p9 = pnand %p1276_p7, %p190_p8 }
   0xd   : > { %v1280_v0 = vld [vmem:[%s2685_s1 + $0x40] sm:$0xff] (!%p191_p9)  ;;  %v1281_v1 = vld [vmem:[%s2685_s1 + $0x48] sm:$0xff] (!%p191_p9)  ;;  %v1282_v2 = vld [vmem:[%s2685_s1 + $0x50] sm:$0xff] (!%p191_p9)  ;;  %p218_p10 = scmp.lt.s32.totalorder (!%p191_p9), %s2222_s22, 1  ;;  %vm223_vm0 = vcmask (!%p191_p9), 517120   ;;  %v2167_v5 = vmov (!%p191_p9), 0.0  }
   0xe   : > { %194 = sbr.rel (%p191_p9) target bundleno = 654 (0x28e), region = 40  ;;  %v1805_v3 = vpack.c.bf16 (!%p191_p9), %v1281_v1, %v1280_v0  ;;  %v1283_v4 = vld [vmem:[%s2685_s1 + $0x58] sm:$0xff] (!%p191_p9)  ;;  %224 = vst.msk [vmem:[#allocation2] sm:$0x3] (!%p191_p9), %vm223_vm0, %v2167_v5  ;;  %225 = vst.msk [vmem:[#allocation2 + $0x12] sm:$0x3] (!%p191_p9), %vm223_vm0, %v2167_v5 }
   0xf   : > { %707 = vst [vmem:[#allocation3] sm:$0x3] (!%p191_p9), %v2167_v5  ;;  %708 = vst [vmem:[#allocation3 + $0x12] sm:$0x3] (!%p191_p9), %v2167_v5  ;;  %v1809_v6 = vpack.c.bf16 (!%p191_p9), %v1283_v4, %v1282_v2  ;;  %v1284_v7 = vld [vmem:[%s2685_s1 + $0x60] sm:$0xff] (!%p191_p9)  ;;  %v1285_v8 = vld [vmem:[%s2685_s1 + $0x68] sm:$0xff] (!%p191_p9) }
  0x10   : > { %1806 = vmatprep.subr.bf16.mxu0 (!%p191_p9), %v1805_v3  ;;  %vm228_vm1 = vcmask (!%p191_p9), 523264   ;;  %v1813_v9 = vpack.c.bf16 (!%p191_p9), %v1285_v8, %v1284_v7  ;;  %v1286_v10 = vld [vmem:[%s2685_s1 + $0x70] sm:$0xff] (!%p191_p9)  ;;  %v1287_v11 = vld [vmem:[%s2685_s1 + $0x78] sm:$0xff] (!%p191_p9)  ;;  %v233_v15 = vld [vmem:[%s2685_s1] sm:$0xff] (!%p191_p9)  ;;  %s215_s12 = sand.u32 (!%p191_p9), 1, %s2157_s19  }
  0x11   : > { %1808 = vmatpush3.bf16.msra.mxu0 (!%p191_p9), %v1805_v3  ;;  %v1817_v14 = vpack.c.bf16 (!%p191_p9), %v1287_v11, %v1286_v10  ;;  %v234_v16 = vld [vmem:[%s2685_s1 + $0x8] sm:$0xff] (!%p191_p9)  ;;  %v235_v19 = vld [vmem:[%s2685_s1 + $0x10] sm:$0xff] (!%p191_p9)  ;;  %v236_v20 = vld [vmem:[%s2685_s1 + $0x18] sm:$0xff] (!%p191_p9)  ;;  %s1277_s13 = sshll.u32 (!%p191_p9), %s215_s12, 4 }
  0x12   : > { %1810 = vmatprep.subr.bf16.mxu0 (!%p191_p9), %v1809_v6  ;;  %v1821_v17 = vpack.c.bf16 (!%p191_p9), %v234_v16, %v233_v15  ;;  %v1825_v22 = vpack.c.bf16 (!%p191_p9), %v236_v20, %v235_v19  ;;  %v713_v24 = vld [vmem:[%s2687_s3] sm:$0xff] (!%p191_p9)  ;;  %v714_v25 = vld [vmem:[%s2687_s3 + $0x8] sm:$0xff] (!%p191_p9)  ;;  %v715_v29 = vld [vmem:[%s2687_s3 + $0x10] sm:$0xff] (!%p191_p9)  ;;  %s217_s16 = scalar_lea.vmem (!%p191_p9), [#allocation4], %s1277_s13 }
  0x13   : > { %v237_v26 = vld [vmem:[%s2685_s1 + $0x20] sm:$0xff] (!%p191_p9)  ;;  %v238_v27 = vld [vmem:[%s2685_s1 + $0x28] sm:$0xff] (!%p191_p9)  ;;  %v1917_v28 = vpack.c.bf16 (!%p191_p9), %v714_v25, %v713_v24  ;;  %v716_v30 = vld [vmem:[%s2687_s3 + $0x18] sm:$0xff] (!%p191_p9) }
  0x14   : > { %v1921_v31 = vpack.c.bf16 (!%p191_p9), %v716_v30, %v715_v29  ;;  %v717_v32 = vld [vmem:[%s2687_s3 + $0x20] sm:$0xff] (!%p191_p9)  ;;  %v718_v33 = vld [vmem:[%s2687_s3 + $0x28] sm:$0xff] (!%p191_p9)  ;;  %v1829_v34 = vpack.c.bf16 (!%p191_p9), %v238_v27, %v237_v26  ;;  %v239_v35 = vld [vmem:[%s2685_s1 + $0x30] sm:$0xff] (!%p191_p9) }
  0x15   : > { %s219_s17 = scalar_select %p218_p10, %s2222_s22, 1  ;;  %1812 = vmatpush3.bf16.msra.mxu0 %v1809_v6  ;;  %1918 = vmatprep.subr.bf16.mxu1 %v1917_v28  ;;  %v240_v36 = vld [vmem:[%s2685_s1 + $0x38] sm:$0xff]  ;;  %v1925_v37 = vpack.c.bf16 %v718_v33, %v717_v32  ;;  %v719_v38 = vld [vmem:[%s2687_s3 + $0x30] sm:$0xff]  ;;  %v1292_v41 = vld [vmem:[%s2685_s1 + $0x80] sm:$0xff] }
  0x16   : > { %1814 = vmatprep.subr.bf16.mxu0 %v1813_v9  ;;  %1920 = vmatpush3.bf16.msra.mxu1 %v1917_v28  ;;  %v720_v39 = vld [vmem:[%s2687_s3 + $0x38] sm:$0xff]  ;;  %v1833_v40 = vpack.c.bf16 %v240_v36, %v239_v35  ;;  %v1293_v42 = vld [vmem:[%s2685_s1 + $0x88] sm:$0xff]  ;;  %v721_v44 = vld [vmem:[%s2687_s3 + $0x40] sm:$0xff] }
  0x17   : > { %s1393_s23 = sshll.u32 %s219_s17, 4  ;;  %1922 = vmatprep.subr.bf16.mxu1 %v1921_v31  ;;  %v1929_v43 = vpack.c.bf16 %v720_v39, %v719_v38  ;;  %v722_v45 = vld [vmem:[%s2687_s3 + $0x48] sm:$0xff]  ;;  %v1837_v46 = vpack.c.bf16 %v1293_v42, %v1292_v41  ;;  %v1294_v47 = vld [vmem:[%s2685_s1 + $0x90] sm:$0xff]  ;;  %v1295_v48 = vld [vmem:[%s2685_s1 + $0x98] sm:$0xff]  ;;  %s1211_s17 = sshll.u32 %s217_s16, 4  ;;  %s2639_s17 = int_to_ptr.vmem [resolvable:$true] %s1211_s17 }
  0x18   : > { %s222_s7 = scalar_lea.vmem %s2684_s0, %s1393_s23  ;;  %v1933_v49 = vpack.c.bf16 %v722_v45, %v721_v44  ;;  %v1841_v51 = vpack.c.bf16 %v1295_v48, %v1294_v47  ;;  %v1296_v53 = vld [vmem:[%s2685_s1 + $0xa0] sm:$0xff]  ;;  %v1297_v54 = vld [vmem:[%s2685_s1 + $0xa8] sm:$0xff]  ;;  %v1298_v56 = vld [vmem:[%s2685_s1 + $0xb0] sm:$0xff]  ;;  %s1394_s23 = sshll.u32 %s2222_s22, 8 }
  0x19   : > { %v226_v12 = vld [vmem:[%s222_s7] sm:$0xff]  ;;  %v227_v13 = vld [vmem:[%s222_s7 + $0x8] sm:$0xff]  ;;  %1816 = vmatpush3.bf16.msra.mxu0 %v1813_v9  ;;  %v1845_v55 = vpack.c.bf16 %v1297_v54, %v1296_v53  ;;  %v1299_v57 = vld [vmem:[%s2685_s1 + $0xb8] sm:$0xff]  ;;  %s2637_s30 = scalar_lea.hbm %s2689_s5, %s1394_s23  ;;  %s2643_s22 = scalar_lea.sflag [#allocation5], %s215_s12 }
  0x1a   : > { %229 = vst.msk [vmem:[#allocation2 + $0x2] sm:$0xff] %vm228_vm1, %v226_v12  ;;  %230 = vst.msk [vmem:[#allocation2 + $0xa] sm:$0xff] %vm228_vm1, %v227_v13  ;;  %1818 = vmatprep.subr.bf16.mxu0 %v1817_v14  ;;  %1924 = vmatpush3.bf16.msra.mxu1 %v1921_v31  ;;  %v1849_v58 = vpack.c.bf16 %v1299_v57, %v1298_v56  ;;  %v1302_v59 = vld [vmem:[%s2685_s1 + $0xc0] sm:$0xff]  ;;  %v1303_v60 = vld [vmem:[%s2685_s1 + $0xc8] sm:$0xff]  ;;  %s2103_s6 = scalar_lea.vmem %s2639_s17, 256  ;;  %s2168_s7 = smov [#allocation4]  }
  0x1b   : > { %1926 = vmatprep.subr.bf16.mxu1 %v1925_v37  ;;  %v1853_v61 = vpack.c.bf16 %v1303_v60, %v1302_v59  ;;  %v1304_v62 = vld [vmem:[%s2685_s1 + $0xd0] sm:$0xff]  ;;  %v1305_v63 = vld [vmem:[%s2685_s1 + $0xd8] sm:$0xff]  ;;  %v1306_v3 = vld [vmem:[%s2685_s1 + $0xe0] sm:$0xff]  ;;  %p2104_p11 = scmp.ne.s32.totalorder %s2639_s17, %s2103_s6  ;;  %s2107_s8 = sshll.u32 %s2168_s7, 4  ;;  %s2108_s8 = int_to_ptr.vmem [resolvable:$false] %s2107_s8 }
  0x1c   : > { %v1857_v1 = vpack.c.bf16 %v1305_v63, %v1304_v62  ;;  %v1307_v4 = vld [vmem:[%s2685_s1 + $0xe8] sm:$0xff]  ;;  %v1308_v6 = vld [vmem:[%s2685_s1 + $0xf0] sm:$0xff]  ;;  %v1309_v7 = vld [vmem:[%s2685_s1 + $0xf8] sm:$0xff]  ;;  %s2109_s9 = scalar_lea.vmem %s2108_s8, 512  ;;  %p2110_p0 = scmp.lt.s32.totalorder %s2639_s17, %s2108_s8 }
  0x1d   : > { %1820 = vmatpush3.bf16.msra.mxu0 %v1817_v14  ;;  %v1861_v5 = vpack.c.bf16 %v1307_v4, %v1306_v3  ;;  %v1865_v8 = vpack.c.bf16 %v1309_v7, %v1308_v6  ;;  %v1312_v9 = vld [vmem:[%s2685_s1 + $0x100] sm:$0xff]  ;;  %v1313_v10 = vld [vmem:[%s2685_s1 + $0x108] sm:$0xff]  ;;  %v1314_v12 = vld [vmem:[%s2685_s1 + $0x110] sm:$0xff]  ;;  %p2105_p12 = pnand %p2104_p11, %p2239_p5  ;;  %p2111_p1 = scmp.lt.s32.totalorder %s2109_s9, %s2103_s6 }
  0x1e   : > { %1822 = vmatprep.subr.bf16.mxu0 %v1821_v17  ;;  %1928 = vmatpush3.bf16.msra.mxu1 %v1925_v37  ;;  %v1869_v11 = vpack.c.bf16 %v1313_v10, %v1312_v9  ;;  %v1315_v13 = vld [vmem:[%s2685_s1 + $0x118] sm:$0xff]  ;;  %v1318_v20 = vld [vmem:[%s2685_s1 + $0x130] sm:$0xff]  ;;  %v1324_v24 = vld [vmem:[%s2687_s3 + $0x88] sm:$0xff] }
  0x1f   : > { %1930 = vmatprep.subr.bf16.mxu1 %v1929_v43  ;;  %v1873_v15 = vpack.c.bf16 %v1315_v13, %v1314_v12  ;;  %v1325_v26 = vld [vmem:[%s2687_s3 + $0x90] sm:$0xff]  ;;  %v1326_v27 = vld [vmem:[%s2687_s3 + $0x98] sm:$0xff]  ;;  %v1327_v30 = vld [vmem:[%s2687_s3 + $0xa0] sm:$0xff]  ;;  %p2106_p13 = pneg %p2105_p12  ;;  %p2112_p2 = por %p2111_p1, %p2110_p0 }
  0x20   : > { %v1889_v29 = vpack.c.bf16 %v1326_v27, %v1325_v26  ;;  %v1328_v31 = vld [vmem:[%s2687_s3 + $0xa8] sm:$0xff]  ;;  %v1329_v33 = vld [vmem:[%s2687_s3 + $0xb0] sm:$0xff]  ;;  %v1331_v36 = vld [vmem:[%s2687_s3 + $0xc0] sm:$0xff] }
  0x21   : > { %v241_v18 = vld [vmem:[#allocation2 + $0x1] sm:$0xff]  ;;  %v242_v21 = vld [vmem:[#allocation2 + $0x9] sm:$0xff]  ;;  %v1893_v32 = vpack.c.bf16 %v1328_v31, %v1327_v30  ;;  %v1322_v60 = vld [vmem:[%s2686_s2] ss:$0 sm:$0xff]  ;;  %p2113_p3 = pnand %p2112_p2, %p2106_p13 }
  0x22   : > { %1551 = vmatprep.mubr.msk.f32.mxu0 %vm228_vm1, %v241_v18  ;;  %v231_v23 = vld [vmem:[#allocation2] sm:$0xff]  ;;  %v232_v50 = vld [vmem:[#allocation2 + $0x8] sm:$0xff]  ;;  %1932 = vmatpush3.bf16.msra.mxu1 %v1929_v43  ;;  %v723_v39 = vld [vmem:[%s2687_s3 + $0x50] sm:$0xff] }
  0x23   : > { %1552 = vmatmul.mubr.msk.f32.vlgmr.msra.gmra.mrb[0].mxu0 %vm228_vm1, %v242_v21  ;;  %v414_v52 = vld [vmem:[#allocation2 + $0x2] sm:$0xff]  ;;  %1934 = vmatprep.subr.bf16.mxu1 %v1933_v49  ;;  %v415_v0 = vld [vmem:[#allocation2 + $0xa] sm:$0xff]  ;;  %v1319_v21 = vld [vmem:[%s2685_s1 + $0x138] sm:$0xff] }
  0x24   : > { %1824 = vmatpush3.bf16.msra.mxu0 %v1821_v17  ;;  %1570 = vmatprep.mubr.msk.f32.mxu0 %vm228_vm1, %v231_v23  ;;  %v508_v2 = vld [vmem:[#allocation2 + $0x3] sm:$0xff]  ;;  %v509_v14 = vld [vmem:[#allocation2 + $0xb] sm:$0xff]  ;;  %v1334_v43 = vld [vmem:[%s2687_s3 + $0xd8] sm:$0xff] }
  0x25   : > { %1826 = vmatprep.subr.bf16.mxu0 %v1825_v22  ;;  %v602_v16 = vld [vmem:[#allocation2 + $0x4] sm:$0xff]  ;;  %v603_v28 = vld [vmem:[#allocation2 + $0xc] sm:$0xff]  ;;  %v1342_v4 = vld [vmem:[%s2687_s3 + $0x118] sm:$0xff] }
  0x26   : > { %1936 = vmatpush3.bf16.msra.mxu1 %v1933_v49  ;;  %v1316_v17 = vld [vmem:[%s2685_s1 + $0x120] sm:$0xff]  ;;  %v1317_v18 = vld [vmem:[%s2685_s1 + $0x128] sm:$0xff]  ;;  %v1333_v42 = vld [vmem:[%s2687_s3 + $0xd0] sm:$0xff] }
  0x27   : > { %v1877_v19 = vpack.c.bf16 %v1317_v18, %v1316_v17  ;;  %v1323_v23 = vld [vmem:[%s2687_s3 + $0x80] sm:$0xff]  ;;  %v1332_v37 = vld [vmem:[%s2687_s3 + $0xc8] sm:$0xff]  ;;  %v1905_v44 = vpack.c.bf16 %v1334_v43, %v1333_v42  ;;  %v1337_v53 = vld [vmem:[%s2687_s3 + $0xf0] sm:$0xff] }
  0x28   : > { %1828 = vmatpush3.bf16.msra.mxu0 %v1825_v22  ;;  %v1881_v22 = vpack.c.bf16 %v1319_v21, %v1318_v20  ;;  %v1885_v25 = vpack.c.bf16 %v1324_v24, %v1323_v23  ;;  %v1901_v38 = vpack.c.bf16 %v1332_v37, %v1331_v36  ;;  %v725_v45 = vld [vmem:[%s2687_s3 + $0x60] sm:$0xff]  ;;  %v1336_v49 = vld [vmem:[%s2687_s3 + $0xe8] sm:$0xff]  ;;  %v1341_v3 = vld [vmem:[%s2687_s3 + $0x110] sm:$0xff] }
  0x29   : > { %1830 = vmatprep.subr.bf16.mxu0 %v1829_v34  ;;  %v1335_v48 = vld [vmem:[%s2687_s3 + $0xe0] sm:$0xff]  ;;  %v1345_v13 = vld [vmem:[%s2687_s3 + $0x130] sm:$0xff]  ;;  %v1348_v17 = vld [vmem:[%s2687_s3 + $0x148] sm:$0xff] }
  0x2a   : > { %v1339_v57 = vld [vmem:[%s2687_s3 + $0x100] sm:$0xff]  ;;  %v1350_v20 = vld [vmem:[%s2687_s3 + $0x158] sm:$0xff]  ;;  %v1352_v23 = vld [vmem:[%s2687_s3 + $0x168] sm:$0xff] }
  0x2b   : > { %v1343_v10 = vld [vmem:[%s2687_s3 + $0x120] sm:$0xff]  ;;  %v1354_v26 = vld [vmem:[%s2687_s3 + $0x178] sm:$0xff]  ;;  %v1357_v31 = vld [vmem:[%s2687_s3 + $0x190] sm:$0xff] }
  0x2c   : > { %1832 = vmatpush3.bf16.msra.mxu0 %v1829_v34  ;;  %v1330_v34 = vld [vmem:[%s2687_s3 + $0xb8] sm:$0xff]  ;;  %v1364_v42 = vld [vmem:[%s2687_s3 + $0x1c8] sm:$0xff] }
  0x2d   : > { %1834 = vmatprep.subr.bf16.mxu0 %v1833_v40  ;;  %v1897_v35 = vpack.c.bf16 %v1330_v34, %v1329_v33  ;;  %v1359_v34 = vld [vmem:[%s2687_s3 + $0x1a0] sm:$0xff] }
  0x30   : > { %1836 = vmatpush3.bf16.msra.mxu0 %v1833_v40  ;;  %v724_v40 = vld [vmem:[%s2687_s3 + $0x58] sm:$0xff] }
  0x31   : > { %1838 = vmatprep.subr.bf16.mxu0 %v1837_v46  ;;  %v1937_v41 = vpack.c.bf16 %v724_v40, %v723_v39  ;;  %v1362_v39 = vld [vmem:[%s2687_s3 + $0x1b8] sm:$0xff] }
  0x33   : > { %1571 = vmatmul.mubr.msk.f32.vlgmr.msra.gmra.mrb[0].mxu0 %vm228_vm1, %v232_v50  ;;  %1938 = vmatprep.subr.bf16.mxu1 %v1937_v41  ;;  %v1909_v50 = vpack.c.bf16 %v1336_v49, %v1335_v48  ;;  %v1368_v48 = vld [vmem:[%s2687_s3 + $0x1e8] sm:$0xff] }
  0x34   : > { %1840 = vmatpush3.bf16.msra.mxu0 %v1837_v46  ;;  %1589 = vmatprep.mubr.msk.f32.mxu0 %vm228_vm1, %v414_v52  ;;  %v726_v46 = vld [vmem:[%s2687_s3 + $0x68] sm:$0xff]  ;;  %v728_v52 = vld [vmem:[%s2687_s3 + $0x78] sm:$0xff] }
  0x35   : > { %1842 = vmatprep.subr.bf16.mxu0 %v1841_v51  ;;  %1940 = vmatpush3.bf16.msra.mxu1 %v1937_v41  ;;  %v1941_v47 = vpack.c.bf16 %v726_v46, %v725_v45  ;;  %v1363_v41 = vld [vmem:[%s2687_s3 + $0x1c0] sm:$0xff]  ;;  %v1366_v45 = vld [vmem:[%s2687_s3 + $0x1d8] sm:$0xff] }
  0x36   : > { %v1997_v43 = vpack.c.bf16 %v1364_v42, %v1363_v41 }
  0x37   : > { %1942 = vmatprep.subr.bf16.mxu1 %v1941_v47 }
  0x38   : > { %1844 = vmatpush3.bf16.msra.mxu0 %v1841_v51  ;;  %v727_v51 = vld [vmem:[%s2687_s3 + $0x70] sm:$0xff] }
  0x39   : > { %1846 = vmatprep.subr.bf16.mxu0 %v1845_v55  ;;  %1944 = vmatpush3.bf16.msra.mxu1 %v1941_v47  ;;  %v1945_v54 = vpack.c.bf16 %v728_v52, %v727_v51  ;;  %v1367_v47 = vld [vmem:[%s2687_s3 + $0x1e0] sm:$0xff]  ;;  %v1370_v51 = vld [vmem:[%s2687_s3 + $0x1f8] sm:$0xff] }
  0x3a   : > { %v2005_v49 = vpack.c.bf16 %v1368_v48, %v1367_v47 }
  0x3b   : > { %1946 = vmatprep.subr.bf16.mxu1 %v1945_v54 }
  0x3c   : > { %1848 = vmatpush3.bf16.msra.mxu0 %v1845_v55  ;;  %v1338_v55 = vld [vmem:[%s2687_s3 + $0xf8] sm:$0xff] }
  0x3d   : > { %1850 = vmatprep.subr.bf16.mxu0 %v1849_v58  ;;  %v1913_v56 = vpack.c.bf16 %v1338_v55, %v1337_v53  ;;  %1948 = vmatpush3.bf16.msra.mxu1 %v1945_v54  ;;  %v1371_v53 = vld [vmem:[%s2687_s3 + $0x200] sm:$0xff]  ;;  %v1372_v54 = vld [vmem:[%s2687_s3 + $0x208] sm:$0xff] }
  0x3e   : > { %v2013_v55 = vpack.c.bf16 %v1372_v54, %v1371_v53 }
  0x40   : > { %1852 = vmatpush3.bf16.msra.mxu0 %v1849_v58  ;;  %v1340_v58 = vld [vmem:[%s2687_s3 + $0x108] sm:$0xff] }
  0x41   : > { %1854 = vmatprep.subr.bf16.mxu0 %v1853_v61  ;;  %v1949_v59 = vpack.c.bf16 %v1340_v58, %v1339_v57  ;;  %v1374_v57 = vld [vmem:[%s2687_s3 + $0x218] sm:$0xff] }
  0x43   : > { %1590 = vmatmul.mubr.msk.f32.vlgmr.msra.gmra.mrb[0].mxu0 %vm228_vm1, %v415_v0  ;;  %1950 = vmatprep.subr.bf16.mxu1 %v1949_v59 }
  0x44   : > { %1856 = vmatpush3.bf16.msra.mxu0 %v1853_v61  ;;  %1608 = vmatprep.mubr.msk.f32.mxu0 %vm228_vm1, %v508_v2 }
  0x45   : > { %1858 = vmatprep.subr.bf16.mxu0 %v1857_v1 }
  0x48   : > { %1860 = vmatpush3.bf16.msra.mxu0 %v1857_v1 }
  0x49   : > { %1862 = vmatprep.subr.bf16.mxu0 %v1861_v5 }
  0x4c   : > { %1864 = vmatpush3.bf16.msra.mxu0 %v1861_v5 }
  0x4d   : > { %1866 = vmatprep.subr.bf16.mxu0 %v1865_v8 }
  0x50   : > { %1868 = vmatpush3.bf16.msra.mxu0 %v1865_v8  ;;  %v1953_v8 = vpack.c.bf16 %v1342_v4, %v1341_v3  ;;  %v1379_v3 = vld [vmem:[%s2687_s3 + $0x240] sm:$0xff]  ;;  %v1380_v4 = vld [vmem:[%s2687_s3 + $0x248] sm:$0xff] }
  0x51   : > { %1870 = vmatprep.subr.bf16.mxu0 %v1869_v11 }
  0x53   : > { %1609 = vmatmul.mubr.msk.f32.vlgmr.msra.gmra.mrb[0].mxu0 %vm228_vm1, %v509_v14  ;;  %v1346_v14 = vld [vmem:[%s2687_s3 + $0x138] sm:$0xff] }
  0x54   : > { %1872 = vmatpush3.bf16.msra.mxu0 %v1869_v11  ;;  %1627 = vmatprep.mubr.msk.f32.mxu0 %vm228_vm1, %v602_v16  ;;  %v1344_v11 = vld [vmem:[%s2687_s3 + $0x128] sm:$0xff]  ;;  %v1347_v16 = vld [vmem:[%s2687_s3 + $0x140] sm:$0xff] }
  0x55   : > { %1874 = vmatprep.subr.bf16.mxu0 %v1873_v15  ;;  %v1957_v12 = vpack.c.bf16 %v1344_v11, %v1343_v10  ;;  %v1965_v18 = vpack.c.bf16 %v1348_v17, %v1347_v16  ;;  %v1384_v10 = vld [vmem:[%s2687_s3 + $0x268] sm:$0xff] }
  0x58   : > { %1876 = vmatpush3.bf16.msra.mxu0 %v1873_v15  ;;  %v1961_v15 = vpack.c.bf16 %v1346_v14, %v1345_v13  ;;  %v1386_v13 = vld [vmem:[%s2687_s3 + $0x278] sm:$0xff] }
  0x59   : > { %1878 = vmatprep.subr.bf16.mxu0 %v1877_v19 }
  0x5c   : > { %1880 = vmatpush3.bf16.msra.mxu0 %v1877_v19  ;;  %v1349_v19 = vld [vmem:[%s2687_s3 + $0x150] sm:$0xff] }
  0x5d   : > { %1882 = vmatprep.subr.bf16.mxu0 %v1881_v22  ;;  %v1969_v21 = vpack.c.bf16 %v1350_v20, %v1349_v19  ;;  %v1387_v19 = vld [vmem:[%s2688_s4] ss:$0 sm:$0xff] }
  0x60   : > { %1884 = vmatpush3.bf16.msra.mxu0 %v1881_v22  ;;  %v1351_v22 = vld [vmem:[%s2687_s3 + $0x160] sm:$0xff] }
  0x61   : > { %1886 = vmatprep.subr.bf16.mxu0 %v1885_v25  ;;  %v1973_v24 = vpack.c.bf16 %v1352_v23, %v1351_v22 }
  0x63   : > { %1628 = vmatmul.mubr.msk.f32.vlgmr.msra.gmra.mrb[0].mxu0 %vm228_vm1, %v603_v28  ;;  %v1355_v28 = vld [vmem:[%s2687_s3 + $0x180] sm:$0xff] }
  0x64   : > { %1888 = vmatpush3.bf16.msra.mxu0 %v1885_v25  ;;  %v1353_v25 = vld [vmem:[%s2687_s3 + $0x170] sm:$0xff] }
  0x65   : > { %1890 = vmatprep.subr.bf16.mxu0 %v1889_v29  ;;  %v1977_v27 = vpack.c.bf16 %v1354_v26, %v1353_v25 }
  0x68   : > { %1892 = vmatpush3.bf16.msra.mxu0 %v1889_v29  ;;  %v1356_v29 = vld [vmem:[%s2687_s3 + $0x188] sm:$0xff] }
  0x69   : > { %1894 = vmatprep.subr.bf16.mxu0 %v1893_v32  ;;  %v1981_v30 = vpack.c.bf16 %v1356_v29, %v1355_v28 }
  0x6c   : > { %1896 = vmatpush3.bf16.msra.mxu0 %v1893_v32  ;;  %v1358_v32 = vld [vmem:[%s2687_s3 + $0x198] sm:$0xff] }
  0x6d   : > { %1898 = vmatprep.subr.bf16.mxu0 %v1897_v35  ;;  %v1985_v33 = vpack.c.bf16 %v1358_v32, %v1357_v31 }
  0x70   : > { %1900 = vmatpush3.bf16.msra.mxu0 %v1897_v35  ;;  %v1360_v35 = vld [vmem:[%s2687_s3 + $0x1a8] sm:$0xff] }
  0x71   : > { %1902 = vmatprep.subr.bf16.mxu0 %v1901_v38  ;;  %v1989_v37 = vpack.c.bf16 %v1360_v35, %v1359_v34 }
  0x74   : > { %1904 = vmatpush3.bf16.msra.mxu0 %v1901_v38  ;;  %v1361_v38 = vld [vmem:[%s2687_s3 + $0x1b0] sm:$0xff] }
  0x75   : > { %1906 = vmatprep.subr.bf16.mxu0 %v1905_v44  ;;  %v1993_v40 = vpack.c.bf16 %v1362_v39, %v1361_v38 }
  0x78   : > { %1908 = vmatpush3.bf16.msra.mxu0 %v1905_v44  ;;  %v1365_v44 = vld [vmem:[%s2687_s3 + $0x1d0] sm:$0xff] }
  0x79   : > { %1910 = vmatprep.subr.bf16.mxu0 %v1909_v50  ;;  %v2001_v46 = vpack.c.bf16 %v1366_v45, %v1365_v44 }
  0x7c   : > { %1912 = vmatpush3.bf16.msra.mxu0 %v1909_v50  ;;  %v1369_v50 = vld [vmem:[%s2687_s3 + $0x1f0] sm:$0xff] }
  0x7d   : > { %1914 = vmatprep.subr.bf16.mxu0 %v1913_v56  ;;  %v2009_v52 = vpack.c.bf16 %v1370_v51, %v1369_v50 }
  0x80   : > { %1916 = vmatpush3.bf16.msra.mxu0 %v1913_v56  ;;  %v1373_v56 = vld [vmem:[%s2687_s3 + $0x210] sm:$0xff] }
  0x81   : > { %v2017_v58 = vpack.c.bf16 %v1374_v57, %v1373_v56 }
 0x136   : > { %v1629_v61 = vpop.f32.mrb[0].mxu0 }
 0x137   : > { %v704_v62 = vadd.f32 %v1629_v61, %v1322_v60  ;;  %v685_v63 = vpop.f32.mrb[1].mxu0  ;;  %v1376_v61 = vld [vmem:[%s2687_s3 + $0x228] sm:$0xff] }
 0x138   : > { %v703_v0 = vadd.f32 %v1322_v60, %v685_v63  ;;  %v1375_v60 = vld [vmem:[%s2687_s3 + $0x220] sm:$0xff] }
 0x139   : > { %v706_v1 = vmax.f32 %v704_v62, 0.0  ;;  %v2021_v63 = vpack.c.bf16 %v1376_v61, %v1375_v60 }
 0x13a   : > { %v705_v2 = vmax.f32 %v703_v0, 0.0  ;;  %v1377_v0 = vld [vmem:[%s2687_s3 + $0x230] sm:$0xff] }
 0x13b   : > { %710 = vst [vmem:[#allocation3 + $0xa] sm:$0xff] %v706_v1 }
 0x13c   : > { %709 = vst [vmem:[#allocation3 + $0x2] sm:$0xff] %v705_v2 }
 0x143   : > { %v729_v5 = vld [vmem:[#allocation3 + $0x1] sm:$0xff]  ;;  %v730_v7 = vld [vmem:[#allocation3 + $0x9] sm:$0xff] }
 0x144   : > { %v711_v6 = vld [vmem:[#allocation3] sm:$0xff]  ;;  %1662 = vmatprep.mubr.f32.mxu0 %v729_v5  ;;  %v712_v9 = vld [vmem:[#allocation3 + $0x8] sm:$0xff]  ;;  %v2029_v5 = vpack.c.bf16 %v1380_v4, %v1379_v3 }
 0x145   : > { %1697 = vmatprep.mubr.f32.mxu1 %v711_v6  ;;  %1663 = vmatmul.mubr.f32.vlgmr.msra.gmra.mrb[2].mxu0 %v730_v7  ;;  %v994_v36 = vld [vmem:[#allocation3 + $0x3] sm:$0xff]  ;;  %v1381_v6 = vld [vmem:[%s2687_s3 + $0x250] sm:$0xff] }
 0x146   : > { %1698 = vmatmul.mubr.f32.vlgmr.msra.gmra.mrb[0].mxu1 %v712_v9  ;;  %v1090_v62 = vld [vmem:[#allocation3 + $0x4] sm:$0xff] }
 0x147   : > { %1952 = vmatpush3.bf16.msra.mxu1 %v1949_v59  ;;  %1732 = vmatprep.mubr.f32.mxu1 %v705_v2  ;;  %v995_v59 = vld [vmem:[#allocation3 + $0xb] sm:$0xff]  ;;  %v1382_v7 = vld [vmem:[%s2687_s3 + $0x258] sm:$0xff] }
 0x148   : > { %1954 = vmatprep.subr.bf16.mxu1 %v1953_v8  ;;  %v1383_v9 = vld [vmem:[%s2687_s3 + $0x260] sm:$0xff] }
 0x149   : > { %v2037_v11 = vpack.c.bf16 %v1384_v10, %v1383_v9 }
 0x14b   : > { %1956 = vmatpush3.bf16.msra.mxu1 %v1953_v8  ;;  %v2033_v8 = vpack.c.bf16 %v1382_v7, %v1381_v6 }
 0x14c   : > { %1958 = vmatprep.subr.bf16.mxu1 %v1957_v12 }
 0x14f   : > { %1960 = vmatpush3.bf16.msra.mxu1 %v1957_v12  ;;  %v1385_v12 = vld [vmem:[%s2687_s3 + $0x270] sm:$0xff] }
 0x150   : > { %1962 = vmatprep.subr.bf16.mxu1 %v1961_v15  ;;  %v2041_v14 = vpack.c.bf16 %v1386_v13, %v1385_v12 }
 0x153   : > { %1964 = vmatpush3.bf16.msra.mxu1 %v1961_v15  ;;  %v1091_v15 = vld [vmem:[#allocation3 + $0xc] sm:$0xff] }
 0x154   : > { %1966 = vmatprep.subr.bf16.mxu1 %v1965_v18 }
 0x157   : > { %1968 = vmatpush3.bf16.msra.mxu1 %v1965_v18 }
 0x158   : > { %1970 = vmatprep.subr.bf16.mxu1 %v1969_v21 }
 0x15b   : > { %1972 = vmatpush3.bf16.msra.mxu1 %v1969_v21 }
 0x15c   : > { %1974 = vmatprep.subr.bf16.mxu1 %v1973_v24 }
 0x15f   : > { %1976 = vmatpush3.bf16.msra.mxu1 %v1973_v24 }
 0x160   : > { %1978 = vmatprep.subr.bf16.mxu1 %v1977_v27 }
 0x163   : > { %1980 = vmatpush3.bf16.msra.mxu1 %v1977_v27 }
 0x164   : > { %1982 = vmatprep.subr.bf16.mxu1 %v1981_v30 }
 0x166   : > { %1733 = vmatmul.mubr.f32.vlgmr.msra.gmra.mrb[0].mxu1 %v706_v1  ;;  %v1378_v1 = vld [vmem:[%s2687_s3 + $0x238] sm:$0xff] }
 0x167   : > { %1984 = vmatpush3.bf16.msra.mxu1 %v1981_v30  ;;  %1767 = vmatprep.mubr.f32.mxu1 %v994_v36  ;;  %v2025_v2 = vpack.c.bf16 %v1378_v1, %v1377_v0 }
 0x168   : > { %1986 = vmatprep.subr.bf16.mxu1 %v1985_v33 }
 0x16b   : > { %1988 = vmatpush3.bf16.msra.mxu1 %v1985_v33 }
 0x16c   : > { %1990 = vmatprep.subr.bf16.mxu1 %v1989_v37 }
 0x16f   : > { %1992 = vmatpush3.bf16.msra.mxu1 %v1989_v37 }
 0x170   : > { %1994 = vmatprep.subr.bf16.mxu1 %v1993_v40 }
 0x173   : > { %1996 = vmatpush3.bf16.msra.mxu1 %v1993_v40 }
 0x174   : > { %1998 = vmatprep.subr.bf16.mxu1 %v1997_v43 }
 0x177   : > { %2000 = vmatpush3.bf16.msra.mxu1 %v1997_v43 }
 0x178   : > { %2002 = vmatprep.subr.bf16.mxu1 %v2001_v46 }
 0x17b   : > { %2004 = vmatpush3.bf16.msra.mxu1 %v2001_v46 }
 0x17c   : > { %2006 = vmatprep.subr.bf16.mxu1 %v2005_v49 }
 0x17f   : > { %2008 = vmatpush3.bf16.msra.mxu1 %v2005_v49 }
 0x180   : > { %2010 = vmatprep.subr.bf16.mxu1 %v2009_v52 }
 0x183   : > { %2012 = vmatpush3.bf16.msra.mxu1 %v2009_v52 }
 0x184   : > { %2014 = vmatprep.subr.bf16.mxu1 %v2013_v55 }
 0x186   : > { %1768 = vmatmul.mubr.f32.vlgmr.msra.gmra.mrb[0].mxu1 %v995_v59 }
 0x187   : > { %2016 = vmatpush3.bf16.msra.mxu1 %v2013_v55  ;;  %1802 = vmatprep.mubr.f32.mxu1 %v1090_v62 }
 0x188   : > { %2018 = vmatprep.subr.bf16.mxu1 %v2017_v58 }
 0x18b   : > { %2020 = vmatpush3.bf16.msra.mxu1 %v2017_v58 }
 0x18c   : > { %2022 = vmatprep.subr.bf16.mxu1 %v2021_v63 }
 0x18f   : > { %2024 = vmatpush3.bf16.msra.mxu1 %v2021_v63 }
 0x190   : > { %2026 = vmatprep.subr.bf16.mxu1 %v2025_v2 }
 0x193   : > { %2028 = vmatpush3.bf16.msra.mxu1 %v2025_v2 }
 0x194   : > { %2030 = vmatprep.subr.bf16.mxu1 %v2029_v5 }
 0x197   : > { %2032 = vmatpush3.bf16.msra.mxu1 %v2029_v5 }
 0x198   : > { %2034 = vmatprep.subr.bf16.mxu1 %v2033_v8 }
 0x19b   : > { %2036 = vmatpush3.bf16.msra.mxu1 %v2033_v8 }
 0x19c   : > { %2038 = vmatprep.subr.bf16.mxu1 %v2037_v11 }
 0x19f   : > { %2040 = vmatpush3.bf16.msra.mxu1 %v2037_v11 }
 0x1a0   : > { %2042 = vmatprep.subr.bf16.mxu1 %v2041_v14 }
 0x1a3   : > { %2044 = vmatpush3.bf16.msra.mxu1 %v2041_v14 }
 0x1a6   : > { %1803 = vmatmul.mubr.f32.vlgmr.msra.gmra.mrb[0].mxu1 %v1091_v15 }
 0x218   : > { %v1664_v16 = vpop.f32.mrb[2].mxu0 }
 0x219   : > { %v814_v17 = vpop.f32.mrb[3].mxu0 }
 0x279   : > { %v1804_v18 = vpop.f32.mrb[0].mxu1 }
 0x27a   : > { %v2045_v20 = vadd.f32 %v1804_v18, %v1664_v16  ;;  %v1175_v21 = vpop.f32.mrb[1].mxu1 }
 0x27b   : > { %v2046_v22 = vadd.f32 %v1175_v21, %v814_v17 }
 0x27c   : > { %v1194_v23 = vadd.f32 %v2045_v20, %v1387_v19 }
 0x27d   : > { %v1193_v24 = vadd.f32 %v2046_v22, %v1387_v19 }
 0x27e   : > { %1196 = vst.msk [vmem:[%s217_s16 + $0x8] sm:$0xff] %vm228_vm1, %v1194_v23 }
 0x27f   : > { %1195 = vst.msk [vmem:[%s217_s16] sm:$0xff] %vm228_vm1, %v1193_v24 }
 0x280   : > { %2116 = shalt.err (!%p2113_p3)
}
 0x281   : > { %s2117_s10 = scalar_lea.hbm %s2637_s30, 256  ;;  %s2121_s13 = scalar_lea.hbm %s2689_s5, 512 }
 0x282   : > { %p2118_p4 = scmp.ne.s32.totalorder %s2637_s30, %s2117_s10  ;;  %p2122_p9 = scmp.lt.u32.totalorder %s2637_s30, %s2689_s5 }
 0x283   : > { %p2123_p10 = scmp.lt.u32.totalorder %s2121_s13, %s2117_s10  ;;  %p2125_p12 = scmp.lt.u32.totalorder %s2117_s10, %s2637_s30 }
 0x284   : > { %p2119_p7 = pnand %p2118_p4, %p2239_p5 }
 0x285   : > { %p2124_p11 = por %p2123_p10, %p2122_p9 }
 0x286   : > { %p2120_p8 = pneg %p2119_p7 }
 0x287   : > { %p2126_p13 = por %p2125_p12, %p2124_p11 }
 0x289   : > { %p2127_p0 = pnand %p2126_p13, %p2120_p8 }
 0x28b   : > { %2130 = shalt.err (!%p2127_p0)
}
 0x28c   : > { %s2169_s16 = smov 128   ;;  %s2170_s23 = smov 8  }
 0x28d   : > { %2061 = dma.vmem_to_hbm [thread:$0]  (%p2239_p5), %s2639_s17, 256, %s2637_s30, %s2643_s22, %s2169_s16, %s2169_s16, %s2170_s23  }
 0x28e PF: > { %p2067_p1 = scmp.ge.s32.totalorder %s2165_s21, 2  ;;  %s1226_s25 = sand.u32 1, %s2153_s18  }
 0x28f   : > { %s1227_s26 = scalar_lea.sflag [#allocation5], %s1226_s25 }
 0x290   : > { %p2064_p2 = pnand %p2067_p1, %p2243_p6 }
 0x292   : > { %2148 = dma.done.wait (!%p2064_p2), %s1227_s26, 256  }
 0x293   : > { %2150 = vsyncadd (!%p2064_p2), %s1227_s26, 4294967040  ;;  %p15_p3 = scmp.ge.s32.totalorder %s2226_s24, 4   ;;  %s2692_s18 = smov %s2157_s19 }
 0x294   : > { %s2693_s19 = smov %s2161_s20  ;;  %s2694_s20 = smov %s2237_s27 }
 0x295   : > { %s2695_s21 = smov %s2226_s24  ;;  %17 = sbr.rel (!%p15_p3) target bundleno = 3 (0x3), region = 83 }
 0x29c   :  { %1232 = vsyncpa [#allocation5], 1 }
 0x29d   :  { %1234 = vsyncpa [#allocation5 + $0x1], 1 }

</bundles_post_ra>
